<compile_context>
chip_gen: v5e
topology: v5e:2x2
jax: 0.10.0
libtpu: 0.0.40
codegen_flags: <defaults>
</compile_context>

<pallas_src>
import jax
import jax.numpy as jnp
from jax.experimental import pallas as pl
from jax.experimental.pallas import tpu as pltpu


LANE = 128


def _round_up(x, m):
    return (x + m - 1) // m * m


def _gru_step(emb_ref, wih_ref, whh_ref, bias_ref, h_ref):
    """relu(embedding row) -> one GRU step on lane-padded (1, Hp) activations.

    Gate weights are fused along lanes ([r | z | n]) so the six per-gate
    matvecs become two (1,Hp)@(Hp,3Hp) MXU calls.  Returns f32 (1, Hp).
    """
    H = h_ref.shape[-1]
    x = jax.nn.relu(emb_ref[0])                           # (1, Hp), weight dtype
    h = h_ref[...]                                        # (1, Hp), f32
    gi = jnp.dot(x, wih_ref[...], preferred_element_type=jnp.float32)
    gh = jnp.dot(h.astype(whh_ref.dtype), whh_ref[...],
                 preferred_element_type=jnp.float32)
    b = bias_ref[...]                                     # (1, 4Hp), f32
    r = jax.nn.sigmoid(gi[:, 0 * H:1 * H] + gh[:, 0 * H:1 * H] + b[:, 0 * H:1 * H])
    z = jax.nn.sigmoid(gi[:, 1 * H:2 * H] + gh[:, 1 * H:2 * H] + b[:, 1 * H:2 * H])
    n = jnp.tanh(gi[:, 2 * H:3 * H] + b[:, 2 * H:3 * H]
                 + r * (gh[:, 2 * H:3 * H] + b[:, 3 * H:4 * H]))
    return (1.0 - z) * n + z * h


def decoder_rnn_single_kernel(tok_ref,           # SMEM scalar prefetch (index_maps only)
                              emb_ref,           # (1, 1, Hp) gathered embedding row
                              wih_ref, whh_ref,  # (Hp, 3Hp) fused transposed gate weights
                              bias_ref,          # (1, 4Hp)  packed f32 biases
                              h_ref,             # (1, Hp)   previous hidden (f32)
                              wout_ref,          # (Hp, Op)  full output projection
                              bout_ref,          # (1, Op)   f32 output bias (padded -1e30)
                              logp_ref,          # (1, Op)   output log-probs
                              hnew_ref):         # (1, Hp)   output new hidden
    h_new = _gru_step(emb_ref, wih_ref, whh_ref, bias_ref, h_ref)
    hnew_ref[...] = h_new
    logits = jnp.dot(h_new.astype(wout_ref.dtype), wout_ref[...],
                     preferred_element_type=jnp.float32) + bout_ref[...]
    m = jnp.max(logits, axis=-1, keepdims=True)
    lse = m + jnp.log(jnp.sum(jnp.exp(logits - m), axis=-1, keepdims=True))
    logp_ref[...] = logits - lse


def decoder_rnn_stream_kernel(tok_ref,           # SMEM scalar prefetch
                              emb_ref,           # (1, 1, Hp)
                              wih_ref, whh_ref,  # (Hp, 3Hp)
                              bias_ref,          # (1, 4Hp)
                              h_ref,             # (1, Hp)
                              wout_ref,          # (Hp, TILE_O) streamed W_out^T tile
                              bout_ref,          # (1, TILE_O)  streamed b_out tile (f32)
                              logp_ref,          # (n_tiles, TILE_O) output log-probs
                              hnew_ref,          # (1, Hp)      output new hidden
                              m_sc, l_sc):       # (1, 1)       running max / sum-exp
    j = pl.program_id(0)
    last = pl.num_programs(0) - 1

    # GRU step runs once on the first vocab tile; h_new and the LSE state live
    # in VMEM-resident refs (constant out index_map + "arbitrary" grid axis).
    @pl.when(j == 0)
    def _():
        hnew_ref[...] = _gru_step(emb_ref, wih_ref, whh_ref, bias_ref, h_ref)
        m_sc[...] = jnp.full((1, 1), -jnp.inf, jnp.float32)
        l_sc[...] = jnp.zeros((1, 1), jnp.float32)

    # Streamed output projection + online log-sum-exp over vocab tiles.
    h_new = hnew_ref[...]
    logits = jnp.dot(h_new.astype(wout_ref.dtype), wout_ref[...],
                     preferred_element_type=jnp.float32) + bout_ref[...]
    m_prev = m_sc[...]
    m_new = jnp.maximum(m_prev, jnp.max(logits, axis=-1, keepdims=True))
    l_sc[...] = (l_sc[...] * jnp.exp(m_prev - m_new)
                 + jnp.sum(jnp.exp(logits - m_new), axis=-1, keepdims=True))
    m_sc[...] = m_new
    logp_ref[pl.ds(j, 1), :] = logits                     # raw logits for now

    @pl.when(j == last)
    def _():
        lse = m_sc[...] + jnp.log(l_sc[...])
        logp_ref[...] = logp_ref[...] - lse               # finalize log_softmax


def make_params(key, hidden_size, output_size):
    H, O = hidden_size, output_size
    ks = jax.random.split(key, 8)
    bound = 1.0 / jnp.sqrt(jnp.float32(H))
    u = lambda k, shape: jax.random.uniform(k, shape, jnp.float32, -bound, bound)
    return {
        "hidden_size": H,
        "output_size": O,
        "embedding": jax.random.normal(ks[0], (O, H), jnp.float32),
        "w_ih": u(ks[1], (3 * H, H)),     # rows: [r | z | n] (PyTorch layout)
        "w_hh": u(ks[2], (3 * H, H)),
        "b_ih": u(ks[3], (3 * H,)),
        "b_hh": u(ks[4], (3 * H,)),
        "w_out": u(ks[5], (O, H)),
        "b_out": u(ks[6], (O,)),
    }


def decoder_rnn_forward(params, token, hidden, *,
                        weight_dtype=jnp.bfloat16,
                        tile_o=4 * LANE,
                        single_block_budget_bytes=4 << 20):
    H = params["hidden_size"]
    O = params["output_size"]
    assert tile_o % LANE == 0
    Hp = _round_up(H, LANE)
    wbytes = jnp.dtype(weight_dtype).itemsize

    # Projection layout: one big block if the whole W_out^T fits a small VMEM
    # budget (exact log_softmax, no per-tile overhead), else stream tile_o-wide
    # vocab tiles with an online log-sum-exp.
    Op_min = _round_up(O, LANE)
    single_block = Op_min * Hp * wbytes <= single_block_budget_bytes
    if single_block:
        Op, tile, n_tiles = Op_min, Op_min, 1
    else:
        Op = _round_up(O, tile_o)
        tile = tile_o
        n_tiles = Op // tile

    def pad2(a, rows, cols, value=0.0):
        return jnp.pad(a, ((0, rows - a.shape[0]), (0, cols - a.shape[1])),
                       constant_values=value)

    def pad1(v):
        return jnp.pad(v, (0, Hp - H))

    # Token: clamp (the in-kernel/VMEM gather has no bounds check).
    tok = jnp.clip(jnp.asarray(token, jnp.int32).reshape(-1)[:1], 0, O - 1)

    # Embedding table (O, 1, Hp): the gathered block is a lane-aligned (1, Hp)
    # row selected by the scalar-prefetched token inside the index_map, so only
    # H floats of the table are DMA'd.
    emb = pad2(params["embedding"], O, Hp).astype(weight_dtype).reshape(O, 1, Hp)

    # Fused transposed gate weights (Hp, 3Hp), gate order [r | z | n].
    w_ih, w_hh = params["w_ih"], params["w_hh"]

    def fuse(w):
        return jnp.concatenate(
            [pad2(w[g * H:(g + 1) * H, :].T, Hp, Hp) for g in range(3)],
            axis=1).astype(weight_dtype)

    wihT = fuse(w_ih)
    whhT = fuse(w_hh)

    # Packed f32 biases (1, 4Hp): [b_ir+b_hr | b_iz+b_hz | b_in | b_hn].
    b_ih, b_hh = params["b_ih"], params["b_hh"]
    bias = jnp.concatenate([pad1(b_ih[:H] + b_hh[:H]),
                            pad1(b_ih[H:2 * H] + b_hh[H:2 * H]),
                            pad1(b_ih[2 * H:]),
                            pad1(b_hh[2 * H:])]).reshape(1, 4 * Hp).astype(jnp.float32)

    # Output projection.  Padded vocab lanes get a huge negative bias so they
    # never influence the (log-)sum-exp.  b_out must stay f32: casting -1e30 to
    # bf16/fp8 would overflow to -inf and NaN the finalize.
    woutT = pad2(params["w_out"].T, Hp, Op).astype(weight_dtype)          # (Hp, Op)
    bout = jnp.pad(params["b_out"], (0, Op - O),
                   constant_values=-1e30).reshape(1, Op).astype(jnp.float32)

    h0 = pad2(hidden.reshape(1, H).astype(jnp.float32), 1, Hp)

    wout_bufs = max(2, min(3, n_tiles))      # 3-deep W_out pipeline when streaming

    # VMEM sizing (conservative: assume double-buffered GRU weights even though
    # we request Buffered(1)); leaves the compiler headroom for big tiles.
    est = (2 * Hp * wbytes                            # embedding row
           + 2 * 2 * Hp * 3 * Hp * wbytes             # W_ih^T, W_hh^T
           + 2 * (4 * Hp + Hp) * 4                    # packed bias, hidden
           + wout_bufs * (Hp + 1) * tile * wbytes     # W_out^T / b_out tiles
           + 2 * (n_tiles * tile + Hp) * 4)           # log-prob + new-hidden outputs
    vmem_limit = int(min(100 * 2 ** 20, max(32 * 2 ** 20, 2 * est)))
    compiler_params = pltpu.CompilerParams(
        # Vocab axis carries the resident h_new and the online-LSE state, so it
        # must stay "arbitrary" (serial on one TensorCore).
        dimension_semantics=("arbitrary",),
        vmem_limit_bytes=vmem_limit)

    args = (tok, emb, wihT, whhT, bias, h0, woutT, bout)

    if single_block:
        grid_spec = pltpu.PrefetchScalarGridSpec(
            num_scalar_prefetch=1,
            grid=(1,),
            in_specs=[
                pl.BlockSpec((1, 1, Hp), lambda j, tok: (tok[0], 0, 0)),  # emb gather
                pl.BlockSpec((Hp, 3 * Hp), lambda j, tok: (0, 0)),        # W_ih^T
                pl.BlockSpec((Hp, 3 * Hp), lambda j, tok: (0, 0)),        # W_hh^T
                pl.BlockSpec((1, 4 * Hp), lambda j, tok: (0, 0)),         # biases
                pl.BlockSpec((1, Hp), lambda j, tok: (0, 0)),             # hidden
                pl.BlockSpec((Hp, Op), lambda j, tok: (0, 0)),            # W_out^T
                pl.BlockSpec((1, Op), lambda j, tok: (0, 0)),             # b_out
            ],
            out_specs=[
                pl.BlockSpec((1, Op), lambda j, tok: (0, 0)),             # log-probs
                pl.BlockSpec((1, Hp), lambda j, tok: (0, 0)),             # new hidden
            ],
        )
        logp_pad, h_new = pl.pallas_call(
            decoder_rnn_single_kernel,
            out_shape=(jax.ShapeDtypeStruct((1, Op), jnp.float32),
                       jax.ShapeDtypeStruct((1, Hp), jnp.float32)),
            grid_spec=grid_spec,
            compiler_params=compiler_params,
        )(*args)
        logp = logp_pad[:, :O]
    else:
        def run(use_buffered):
            def spec(shape, index_map, bufs):
                if use_buffered and bufs is not None:
                    return pl.BlockSpec(shape, index_map,
                                        pipeline_mode=pl.Buffered(bufs))
                return pl.BlockSpec(shape, index_map)

            grid_spec = pltpu.PrefetchScalarGridSpec(
                num_scalar_prefetch=1,
                grid=(n_tiles,),
                in_specs=[
                    # Grid-invariant refs: DMA'd once, single-buffered.
                    spec((1, 1, Hp), lambda j, tok: (tok[0], 0, 0), 1),
                    spec((Hp, 3 * Hp), lambda j, tok: (0, 0), 1),
                    spec((Hp, 3 * Hp), lambda j, tok: (0, 0), 1),
                    spec((1, 4 * Hp), lambda j, tok: (0, 0), 1),
                    spec((1, Hp), lambda j, tok: (0, 0), 1),
                    # Streamed W_out^T / b_out vocab tiles: deeper pipeline so the
                    # j==0 GRU work hides the first tile DMAs.
                    spec((Hp, tile), lambda j, tok: (0, j), wout_bufs),
                    spec((1, tile), lambda j, tok: (0, j), wout_bufs),
                ],
                out_specs=[
                    pl.BlockSpec((n_tiles, tile), lambda j, tok: (0, 0)),  # log-probs
                    pl.BlockSpec((1, Hp), lambda j, tok: (0, 0)),          # new hidden
                ],
                scratch_shapes=[pltpu.VMEM((1, 1), jnp.float32),   # running max
                                pltpu.VMEM((1, 1), jnp.float32)],  # running sum-exp
            )
            return pl.pallas_call(
                decoder_rnn_stream_kernel,
                out_shape=(jax.ShapeDtypeStruct((n_tiles, tile), jnp.float32),
                           jax.ShapeDtypeStruct((1, Hp), jnp.float32)),
                grid_spec=grid_spec,
                compiler_params=compiler_params,
            )(*args)

        try:
            logp_tiles, h_new = run(True)
        except Exception:
            # pipeline_mode / pl.Buffered unsupported on this jax build: fall
            # back to default (double-buffered) BlockSpecs.
            logp_tiles, h_new = run(False)
        logp = logp_tiles.reshape(1, Op)[:, :O]

    # Matches PyTorch: output (1, output_size), hidden (1, 1, hidden_size).
    return logp, h_new[:, :H].reshape(1, 1, H)


def decoder_rnn_reference(params, token, hidden, weight_dtype=jnp.float32):
    """Pure-JAX reference of the PyTorch forward (same weight dtype handling)."""
    H = params["hidden_size"]
    O = params["output_size"]
    tok = jnp.clip(jnp.asarray(token, jnp.int32), 0, O - 1)
    emb = params["embedding"].astype(weight_dtype)
    w_ih = params["w_ih"].astype(weight_dtype)
    w_hh = params["w_hh"].astype(weight_dtype)
    w_out = params["w_out"].astype(weight_dtype)

    x = jax.nn.relu(emb[tok]).reshape(1, H)
    h = hidden.reshape(1, H).astype(jnp.float32)
    gi = jnp.dot(x, w_ih.T, preferred_element_type=jnp.float32) + params["b_ih"]
    gh = jnp.dot(h.astype(weight_dtype), w_hh.T,
                 preferred_element_type=jnp.float32) + params["b_hh"]
    i_r, i_z, i_n = gi[:, :H], gi[:, H:2 * H], gi[:, 2 * H:]
    h_r, h_z, h_n = gh[:, :H], gh[:, H:2 * H], gh[:, 2 * H:]
    r = jax.nn.sigmoid(i_r + h_r)
    z = jax.nn.sigmoid(i_z + h_z)
    n = jnp.tanh(i_n + r * h_n)
    h_new = (1.0 - z) * n + z * h
    logits = jnp.dot(h_new.astype(weight_dtype), w_out.T,
                     preferred_element_type=jnp.float32) + params["b_out"]
    logp = jax.nn.log_softmax(logits, axis=1)
    return logp, h_new.reshape(1, 1, H)


if __name__ == "__main__":
    key = jax.random.PRNGKey(0)
    k_params, k_hidden, k_rest = jax.random.split(key, 3)

    # Lane-aligned small config: hidden=128, vocab=256.
    hidden_size, output_size = 128, 256
    params = make_params(k_params, hidden_size, output_size)
    token = jnp.int32(3)
    hidden = jax.random.normal(k_hidden, (1, 1, hidden_size), jnp.float32)

    # f32 weights, single-block fast path: strict check against the reference.
    logp, h_new = decoder_rnn_forward(params, token, hidden,
                                      weight_dtype=jnp.float32)
    jax.block_until_ready((logp, h_new))
    logp_ref, h_ref = decoder_rnn_reference(params, token, hidden)
    assert logp.shape == (1, output_size) and h_new.shape == (1, 1, hidden_size)
    assert jnp.allclose(logp, logp_ref, atol=1e-5, rtol=1e-5)
    assert jnp.allclose(h_new, h_ref, atol=1e-5, rtol=1e-5)

    # f32 weights, forced streaming path (2 vocab tiles of 128): strict check.
    logp_s, h_s = decoder_rnn_forward(params, token, hidden,
                                      weight_dtype=jnp.float32,
                                      tile_o=128, single_block_budget_bytes=0)
    jax.block_until_ready((logp_s, h_s))
    assert jnp.allclose(logp_s, logp_ref, atol=1e-5, rtol=1e-5)
    assert jnp.allclose(h_s, h_ref, atol=1e-5, rtol=1e-5)

    # Default (bf16 weights) on both paths; gates / LSE accumulate in f32.
    logp_bf, h_bf = decoder_rnn_forward(params, token, hidden)
    logp_bs, h_bs = decoder_rnn_forward(params, token, hidden,
                                        tile_o=128, single_block_budget_bytes=0)
    jax.block_until_ready((logp_bf, h_bf, logp_bs, h_bs))
    logp_rbf, h_rbf = decoder_rnn_reference(params, token, hidden,
                                            weight_dtype=jnp.bfloat16)
    for lp, hh in ((logp_bf, h_bf), (logp_bs, h_bs)):
        assert jnp.allclose(lp, logp_rbf, atol=5e-2, rtol=5e-2)
        assert jnp.allclose(hh, h_rbf, atol=5e-2, rtol=5e-2)

    # Unaligned sizes exercise the internal lane-padding path (H=32, O=48).
    k_p2, k_h2 = jax.random.split(k_rest)
    params_u = make_params(k_p2, 32, 48)
    hidden_u = jax.random.normal(k_h2, (1, 1, 32), jnp.float32)
    logp_u, h_u = decoder_rnn_forward(params_u, jnp.int32(7), hidden_u,
                                      weight_dtype=jnp.float32)
    jax.block_until_ready((logp_u, h_u))
    logp_ur, h_ur = decoder_rnn_reference(params_u, jnp.int32(7), hidden_u)
    assert logp_u.shape == (1, 48) and h_u.shape == (1, 1, 32)
    assert jnp.allclose(logp_u, logp_ur, atol=1e-5, rtol=1e-5)
    assert jnp.allclose(h_u, h_ur, atol=1e-5, rtol=1e-5)

    print("KERNEL_OK")
</pallas_src>

<mosaic_0001>
module attributes {stable_mosaic.version = 11 : i64} {
  func.func @decoder_rnn_single_kernel(%arg0: i32, %arg1: memref<1xi32, #tpu.memory_space<smem>>, %arg2: memref<1x1x128xf32, #tpu.memory_space<vmem>>, %arg3: memref<128x384xf32, #tpu.memory_space<vmem>>, %arg4: memref<128x384xf32, #tpu.memory_space<vmem>>, %arg5: memref<1x512xf32, #tpu.memory_space<vmem>>, %arg6: memref<1x128xf32, #tpu.memory_space<vmem>>, %arg7: memref<128x256xf32, #tpu.memory_space<vmem>>, %arg8: memref<1x256xf32, #tpu.memory_space<vmem>>, %arg9: memref<1x256xf32, #tpu.memory_space<vmem>>, %arg10: memref<1x128xf32, #tpu.memory_space<vmem>>) attributes {dimension_semantics = [#tpu.dimension_semantics<arbitrary>], iteration_bounds = array<i64: 1>, scalar_prefetch = 1 : i64, scratch_operands = 0 : i64, tpu.core_type = #tpu.core_type<tc>, window_params = [{transform_indices = @transform_0, window_bounds = array<i64: 1, 1, 128>}, {pipeline_mode = #tpu.pipeline_mode<synchronous>, transform_indices = @transform_1, window_bounds = array<i64: 128, 384>}, {pipeline_mode = #tpu.pipeline_mode<synchronous>, transform_indices = @transform_2, window_bounds = array<i64: 128, 384>}, {pipeline_mode = #tpu.pipeline_mode<synchronous>, transform_indices = @transform_3, window_bounds = array<i64: 1, 512>}, {pipeline_mode = #tpu.pipeline_mode<synchronous>, transform_indices = @transform_4, window_bounds = array<i64: 1, 128>}, {pipeline_mode = #tpu.pipeline_mode<synchronous>, transform_indices = @transform_5, window_bounds = array<i64: 128, 256>}, {pipeline_mode = #tpu.pipeline_mode<synchronous>, transform_indices = @transform_6, window_bounds = array<i64: 1, 256>}, {pipeline_mode = #tpu.pipeline_mode<synchronous>, transform_indices = @transform_7, window_bounds = array<i64: 1, 256>}, {pipeline_mode = #tpu.pipeline_mode<synchronous>, transform_indices = @transform_8, window_bounds = array<i64: 1, 128>}]} {
    %c0 = arith.constant 0 : index
    %c0_0 = arith.constant 0 : index
    %c0_1 = arith.constant 0 : index
    %0 = vector.load %arg2[%c0, %c0_0, %c0_1] : memref<1x1x128xf32, #tpu.memory_space<vmem>>, vector<1x1x128xf32>
    %1 = vector.shape_cast %0 : vector<1x1x128xf32> to vector<1x128xf32>
    %cst = arith.constant 0.000000e+00 : f32
    %2 = vector.broadcast %cst : f32 to vector<1x128xf32>
    %3 = arith.maximumf %1, %2 : vector<1x128xf32>
    %c0_2 = arith.constant 0 : index
    %c0_3 = arith.constant 0 : index
    %4 = vector.load %arg6[%c0_2, %c0_3] : memref<1x128xf32, #tpu.memory_space<vmem>>, vector<1x128xf32>
    %c0_4 = arith.constant 0 : index
    %c0_5 = arith.constant 0 : index
    %5 = vector.load %arg3[%c0_4, %c0_5] : memref<128x384xf32, #tpu.memory_space<vmem>>, vector<128x384xf32>
    %cst_6 = arith.constant dense<0.000000e+00> : vector<1x384xf32>
    %6 = tpu.matmul %3, %5, %cst_6 {dimension_numbers = #tpu.dot_dimension_numbers<[1], [0], [0], [1], [0, 0, 1, 1], [], []>} : vector<1x128xf32>, vector<128x384xf32>, vector<1x384xf32> -> vector<1x384xf32>
    %c0_7 = arith.constant 0 : index
    %c0_8 = arith.constant 0 : index
    %7 = vector.load %arg4[%c0_7, %c0_8] : memref<128x384xf32, #tpu.memory_space<vmem>>, vector<128x384xf32>
    %cst_9 = arith.constant dense<0.000000e+00> : vector<1x384xf32>
    %8 = tpu.matmul %4, %7, %cst_9 {dimension_numbers = #tpu.dot_dimension_numbers<[1], [0], [0], [1], [0, 0, 1, 1], [], []>} : vector<1x128xf32>, vector<128x384xf32>, vector<1x384xf32> -> vector<1x384xf32>
    %c0_10 = arith.constant 0 : index
    %c0_11 = arith.constant 0 : index
    %9 = vector.load %arg5[%c0_10, %c0_11] : memref<1x512xf32, #tpu.memory_space<vmem>>, vector<1x512xf32>
    %10 = vector.extract_strided_slice %6 {offsets = [0, 0], sizes = [1, 128], strides = [1, 1]} : vector<1x384xf32> to vector<1x128xf32>
    %11 = vector.extract_strided_slice %8 {offsets = [0, 0], sizes = [1, 128], strides = [1, 1]} : vector<1x384xf32> to vector<1x128xf32>
    %12 = arith.addf %10, %11 : vector<1x128xf32>
    %13 = vector.extract_strided_slice %9 {offsets = [0, 0], sizes = [1, 128], strides = [1, 1]} : vector<1x512xf32> to vector<1x128xf32>
    %14 = arith.addf %12, %13 : vector<1x128xf32>
    %15 = arith.negf %14 : vector<1x128xf32>
    %16 = math.exp %15 : vector<1x128xf32>
    %cst_12 = arith.constant 1.000000e+00 : f32
    %17 = vector.broadcast %cst_12 : f32 to vector<1x128xf32>
    %18 = arith.addf %17, %16 : vector<1x128xf32>
    %19 = arith.divf %17, %18 : vector<1x128xf32>
    %20 = vector.extract_strided_slice %6 {offsets = [0, 128], sizes = [1, 128], strides = [1, 1]} : vector<1x384xf32> to vector<1x128xf32>
    %21 = vector.extract_strided_slice %8 {offsets = [0, 128], sizes = [1, 128], strides = [1, 1]} : vector<1x384xf32> to vector<1x128xf32>
    %22 = arith.addf %20, %21 : vector<1x128xf32>
    %23 = vector.extract_strided_slice %9 {offsets = [0, 128], sizes = [1, 128], strides = [1, 1]} : vector<1x512xf32> to vector<1x128xf32>
    %24 = arith.addf %22, %23 : vector<1x128xf32>
    %25 = arith.negf %24 : vector<1x128xf32>
    %26 = math.exp %25 : vector<1x128xf32>
    %cst_13 = arith.constant 1.000000e+00 : f32
    %27 = vector.broadcast %cst_13 : f32 to vector<1x128xf32>
    %28 = arith.addf %27, %26 : vector<1x128xf32>
    %29 = arith.divf %27, %28 : vector<1x128xf32>
    %30 = vector.extract_strided_slice %6 {offsets = [0, 256], sizes = [1, 128], strides = [1, 1]} : vector<1x384xf32> to vector<1x128xf32>
    %31 = vector.extract_strided_slice %9 {offsets = [0, 256], sizes = [1, 128], strides = [1, 1]} : vector<1x512xf32> to vector<1x128xf32>
    %32 = arith.addf %30, %31 : vector<1x128xf32>
    %33 = vector.extract_strided_slice %8 {offsets = [0, 256], sizes = [1, 128], strides = [1, 1]} : vector<1x384xf32> to vector<1x128xf32>
    %34 = vector.extract_strided_slice %9 {offsets = [0, 384], sizes = [1, 128], strides = [1, 1]} : vector<1x512xf32> to vector<1x128xf32>
    %35 = arith.addf %33, %34 : vector<1x128xf32>
    %36 = arith.mulf %19, %35 : vector<1x128xf32>
    %37 = arith.addf %32, %36 : vector<1x128xf32>
    %38 = math.tanh %37 : vector<1x128xf32>
    %cst_14 = arith.constant 1.000000e+00 : f32
    %39 = vector.broadcast %cst_14 : f32 to vector<1x128xf32>
    %40 = arith.subf %39, %29 : vector<1x128xf32>
    %41 = arith.mulf %40, %38 : vector<1x128xf32>
    %42 = arith.mulf %29, %4 : vector<1x128xf32>
    %43 = arith.addf %41, %42 : vector<1x128xf32>
    %c0_15 = arith.constant 0 : index
    %c0_16 = arith.constant 0 : index
    %44 = vector.load %arg10[%c0_15, %c0_16] : memref<1x128xf32, #tpu.memory_space<vmem>>, vector<1x128xf32>
    tpu.vector_store %arg10[%c0_15, %c0_16], %43 {strides = array<i32>} : memref<1x128xf32, #tpu.memory_space<vmem>>, vector<1x128xf32>,
    %c0_17 = arith.constant 0 : index
    %c0_18 = arith.constant 0 : index
    %45 = vector.load %arg7[%c0_17, %c0_18] : memref<128x256xf32, #tpu.memory_space<vmem>>, vector<128x256xf32>
    %cst_19 = arith.constant dense<0.000000e+00> : vector<1x256xf32>
    %46 = tpu.matmul %43, %45, %cst_19 {dimension_numbers = #tpu.dot_dimension_numbers<[1], [0], [0], [1], [0, 0, 1, 1], [], []>} : vector<1x128xf32>, vector<128x256xf32>, vector<1x256xf32> -> vector<1x256xf32>
    %c0_20 = arith.constant 0 : index
    %c0_21 = arith.constant 0 : index
    %47 = vector.load %arg8[%c0_20, %c0_21] : memref<1x256xf32, #tpu.memory_space<vmem>>, vector<1x256xf32>
    %48 = arith.addf %46, %47 : vector<1x256xf32>
    %cst_22 = arith.constant dense<0xFF800000> : vector<1xf32>
    %49 = vector.multi_reduction <maximumf>, %48, %cst_22 [1] : vector<1x256xf32> to vector<1xf32>
    %50 = vector.shape_cast %49 : vector<1xf32> to vector<1x1xf32>
    %51 = vector.broadcast %50 : vector<1x1xf32> to vector<1x256xf32>
    %52 = arith.subf %48, %51 : vector<1x256xf32>
    %53 = math.exp %52 : vector<1x256xf32>
    %cst_23 = arith.constant dense<0.000000e+00> : vector<1xf32>
    %54 = vector.multi_reduction <add>, %53, %cst_23 [1] : vector<1x256xf32> to vector<1xf32>
    %55 = vector.shape_cast %54 : vector<1xf32> to vector<1x1xf32>
    %56 = math.log %55 : vector<1x1xf32>
    %57 = arith.addf %50, %56 : vector<1x1xf32>
    %58 = vector.broadcast %57 : vector<1x1xf32> to vector<1x256xf32>
    %59 = arith.subf %48, %58 : vector<1x256xf32>
    %c0_24 = arith.constant 0 : index
    %c0_25 = arith.constant 0 : index
    %60 = vector.load %arg9[%c0_24, %c0_25] : memref<1x256xf32, #tpu.memory_space<vmem>>, vector<1x256xf32>
    tpu.vector_store %arg9[%c0_24, %c0_25], %59 {strides = array<i32>} : memref<1x256xf32, #tpu.memory_space<vmem>>, vector<1x256xf32>,
    return
  }
  func.func @transform_0(%arg0: i32, %arg1: memref<1xi32, #tpu.memory_space<smem>>) -> (i32, i32, i32) {
    %c0 = arith.constant 0 : index
    %0 = memref.load %arg1[%c0] : memref<1xi32, #tpu.memory_space<smem>>
    %c0_i32 = arith.constant 0 : i32
    %c0_i32_0 = arith.constant 0 : i32
    %c0_i32_1 = arith.constant 0 : i32
    return %0, %c0_i32, %c0_i32_0 : i32, i32, i32
  }
  func.func @transform_1(%arg0: i32, %arg1: memref<1xi32, #tpu.memory_space<smem>>) -> (i32, i32) {
    %c0_i32 = arith.constant 0 : i32
    %c0_i32_0 = arith.constant 0 : i32
    %c0_i32_1 = arith.constant 0 : i32
    return %c0_i32, %c0_i32_0 : i32, i32
  }
  func.func @transform_2(%arg0: i32, %arg1: memref<1xi32, #tpu.memory_space<smem>>) -> (i32, i32) {
    %c0_i32 = arith.constant 0 : i32
    %c0_i32_0 = arith.constant 0 : i32
    %c0_i32_1 = arith.constant 0 : i32
    return %c0_i32, %c0_i32_0 : i32, i32
  }
  func.func @transform_3(%arg0: i32, %arg1: memref<1xi32, #tpu.memory_space<smem>>) -> (i32, i32) {
    %c0_i32 = arith.constant 0 : i32
    %c0_i32_0 = arith.constant 0 : i32
    %c0_i32_1 = arith.constant 0 : i32
    return %c0_i32, %c0_i32_0 : i32, i32
  }
  func.func @transform_4(%arg0: i32, %arg1: memref<1xi32, #tpu.memory_space<smem>>) -> (i32, i32) {
    %c0_i32 = arith.constant 0 : i32
    %c0_i32_0 = arith.constant 0 : i32
    %c0_i32_1 = arith.constant 0 : i32
    return %c0_i32, %c0_i32_0 : i32, i32
  }
  func.func @transform_5(%arg0: i32, %arg1: memref<1xi32, #tpu.memory_space<smem>>) -> (i32, i32) {
    %c0_i32 = arith.constant 0 : i32
    %c0_i32_0 = arith.constant 0 : i32
    %c0_i32_1 = arith.constant 0 : i32
    return %c0_i32, %c0_i32_0 : i32, i32
  }
  func.func @transform_6(%arg0: i32, %arg1: memref<1xi32, #tpu.memory_space<smem>>) -> (i32, i32) {
    %c0_i32 = arith.constant 0 : i32
    %c0_i32_0 = arith.constant 0 : i32
    %c0_i32_1 = arith.constant 0 : i32
    return %c0_i32, %c0_i32_0 : i32, i32
  }
  func.func @transform_7(%arg0: i32, %arg1: memref<1xi32, #tpu.memory_space<smem>>) -> (i32, i32) {
    %c0_i32 = arith.constant 0 : i32
    %c0_i32_0 = arith.constant 0 : i32
    %c0_i32_1 = arith.constant 0 : i32
    return %c0_i32, %c0_i32_0 : i32, i32
  }
  func.func @transform_8(%arg0: i32, %arg1: memref<1xi32, #tpu.memory_space<smem>>) -> (i32, i32) {
    %c0_i32 = arith.constant 0 : i32
    %c0_i32_0 = arith.constant 0 : i32
    %c0_i32_1 = arith.constant 0 : i32
    return %c0_i32, %c0_i32_0 : i32, i32
  }
}

</mosaic_0001>

<bundles_post_ra>
// kernel: tpu_custom_call.1
= control target key start
LH: loop header
LB: loop body
LE: loop exit
PB: predicated region body
PF: predicated region fallthrough
CT: control target
= control target key end

     0   :  { %16 = vsyncpa [#allocation5], 0  ;;  %s866_s0 = inlined_call_operand.<no memory space> [shape: s32[1], index: 0, kind: input, shape index: {}]   ;;  %s867_s1 = inlined_call_operand.hbm [shape: f32[256,1,128], index: 1, kind: input, shape index: {}]   ;;  %s868_s2 = inlined_call_operand.hbm [shape: f32[128,384], index: 2, kind: input, shape index: {}]   ;;  %s869_s3 = inlined_call_operand.hbm [shape: f32[128,384], index: 3, kind: input, shape index: {}]   ;;  %s870_s4 = inlined_call_operand.vmem [shape: f32[1,512], index: 4, kind: input, shape index: {}]   ;;  %s871_s5 = inlined_call_operand.hbm [shape: f32[1,128], index: 5, kind: input, shape index: {}]   ;;  %s872_s6 = inlined_call_operand.hbm [shape: f32[128,256], index: 6, kind: input, shape index: {}]   ;;  %s873_s7 = inlined_call_operand.vmem [shape: f32[1,256], index: 7, kind: input, shape index: {}]   ;;  %s874_s8 = inlined_call_operand.hbm [shape: f32[1,256], index: 8, kind: output, shape index: {0}]   ;;  %s875_s9 = inlined_call_operand.hbm [shape: f32[1,128], index: 9, kind: output, shape index: {1}]  }
   0x1   :  { %17 = vsyncpa [#allocation8], 0 }
   0x2   :  { %18 = vsyncpa [#allocation11], 0 }
   0x3   :  { %19 = vsyncpa [#allocation6], 0  ;;  %s38_s11 = sshll.u32 %s868_s2, 4  ;;  %s39_s11 = int_to_ptr.hbm [resolvable:$true] %s38_s11 }
   0x4   :  { %20 = vsyncpa [#allocation15], 0  ;;  %s741_s12 = smov [#allocation7]   ;;  %s67_s16 = sshll.u32 %s871_s5, 4  ;;  %s68_s16 = int_to_ptr.hbm [resolvable:$true] %s67_s16 }
   0x5   :  { %s40_s13 = sshll.u32 %s741_s12, 4  ;;  %s742_s17 = smov 384   ;;  %s41_s13 = int_to_ptr.vmem [resolvable:$true] %s40_s13 }
   0x6   :  { %s743_s18 = smov 24   ;;  %s744_s19 = smov [#allocation10]  }
   0x7   :  { %46 = dma.hbm_to_vmem [thread:$0]  %s39_s11, 6144, %s41_s13, [#allocation8], %s742_s17, %s742_s17, %s743_s18  }
   0x8   :  { %s69_s20 = sshll.u32 %s744_s19, 4  ;;  %s26_s24 = scalar_lea.hbm %s867_s1, %s866_s0  ;;  %s70_s20 = int_to_ptr.vmem [resolvable:$true] %s69_s20 }
   0x9   :  { %s28_s25 = sshll.u32 %s26_s24, 4  ;;  %s745_s5 = smov [#allocation4]   ;;  %s29_s25 = int_to_ptr.hbm [resolvable:$true] %s28_s25 }
   0xa   :  { %72 = dma.hbm_to_vmem [thread:$0]  %s68_s16, 16, %s70_s20, [#allocation11]  }
   0xb   :  { %s30_s26 = sshll.u32 %s745_s5, 4  ;;  %s51_s29 = sshll.u32 %s869_s3, 4  ;;  %s31_s26 = int_to_ptr.vmem [resolvable:$true] %s30_s26  ;;  %s52_s29 = int_to_ptr.hbm [resolvable:$true] %s51_s29 }
   0xc   :  { %s611_s30 = sshra.s32 %s29_s25, 4  ;;  %s615_s0 = scalar_lea.hbm %s867_s1, 256  ;;  %s612_s30 = int_to_ptr.hbm [resolvable:$true] %s611_s30 }
   0xd   :  { %s613_s10 = scalar_lea.hbm %s612_s30, 1  ;;  %p616_p1 = scmp.lt.s32.totalorder %s612_s30, %s867_s1 }
   0xe   :  { %p614_p0 = scmp.ne.s32.totalorder %s612_s30, %s613_s10  ;;  %p617_p2 = scmp.lt.s32.totalorder %s615_s0, %s613_s10 }
  0x10   :  { %p618_p3 = por %p617_p2, %p616_p1 }
  0x12   :  { %p619_p4 = pnand %p618_p3, %p614_p0 }
  0x14   :  { %622 = shalt.err (!%p619_p4)
}
  0x15   :  { %33 = dma.hbm_to_vmem [thread:$0]  %s29_s25, 16, %s31_s26, [#allocation5]  }
  0x16   :  { %s77_s16 = sshll.u32 %s872_s6, 4  ;;  %s746_s19 = smov [#allocation9]   ;;  %s78_s16 = int_to_ptr.hbm [resolvable:$true] %s77_s16 }
  0x17   :  { %s53_s20 = sshll.u32 %s746_s19, 4  ;;  %s747_s21 = smov [#allocation12]   ;;  %s54_s20 = int_to_ptr.vmem [resolvable:$true] %s53_s20 }
  0x18   :  { %59 = dma.hbm_to_vmem [thread:$0]  %s52_s29, 6144, %s54_s20, [#allocation8], %s742_s17, %s742_s17, %s743_s18  }
  0x19   :  { %s79_s2 = sshll.u32 %s747_s21, 4  ;;  %s748_s1 = smov 256   ;;  %s80_s2 = int_to_ptr.vmem [resolvable:$true] %s79_s2 }
  0x1a   :  { %s749_s22 = smov 16  }
  0x1b   :  { %85 = dma.hbm_to_vmem [thread:$0]  %s78_s16, 4096, %s80_s2, [#allocation11], %s748_s1, %s748_s1, %s749_s22  }
  0x1c   :  { %731 = dma.done.wait [#allocation5], 16  }
  0x1d   :  { %732 = vsyncadd [#allocation5], 4294967280 }
  0x1e   :  { %733 = dma.done.wait [#allocation8], 12288  }
  0x1f   :  { %734 = vsyncadd [#allocation8], 4294955008 }
  0x20   :  { %735 = dma.done.wait [#allocation11], 4112  }
  0x21   :  { %736 = vsyncadd [#allocation11], 4294963184  ;;  %v157_v0 = vld [vmem:[#allocation7 + $0x168] sm:$0xff]  ;;  %v154_v1 = vld [vmem:[#allocation7 + $0x150] sm:$0xff]  ;;  %vm466_vm8 = vcmask 1040384   ;;  %s516_s5 = sshll.u32 %s875_s9, 4  ;;  %s517_s5 = int_to_ptr.hbm [resolvable:$true] %s516_s5 }
  0x22   :  { %v265_v2 = vld [vmem:[#allocation9 + $0x168] sm:$0xff]  ;;  %160 = vmatpush.msra.mxu0 %v157_v0  ;;  %v262_v3 = vld [vmem:[#allocation9 + $0x150] sm:$0xff]  ;;  %v151_v4 = vld [vmem:[#allocation7 + $0x138] sm:$0xff]  ;;  %s751_s26 = smov [#allocation13]   ;;  %s505_s30 = sshll.u32 %s874_s8, 4  ;;  %s506_s30 = int_to_ptr.hbm [resolvable:$true] %s505_s30 }
  0x23   :  { %268 = vmatpush.msra.mxu3 %v265_v2  ;;  %v259_v5 = vld [vmem:[#allocation9 + $0x138] sm:$0xff]  ;;  %v158_v6 = vld [vmem:[#allocation7 + $0x170] sm:$0xff]  ;;  %v148_v8 = vld [vmem:[#allocation7 + $0x120] sm:$0xff]  ;;  %s503_s27 = sshll.u32 %s751_s26, 4  ;;  %s504_s27 = int_to_ptr.vmem [resolvable:$true] %s503_s27 }
  0x24   :  { %161 = vmatpush.msra.mxu0 %v154_v1  ;;  %v155_v7 = vld [vmem:[#allocation7 + $0x158] sm:$0xff]  ;;  %180 = vmatpush.msra.mxu1 %v158_v6  ;;  %v256_v9 = vld [vmem:[#allocation9 + $0x120] sm:$0xff]  ;;  %v145_v11 = vld [vmem:[#allocation7 + $0x108] sm:$0xff] }
  0x25   :  { %269 = vmatpush.msra.mxu3 %v262_v3  ;;  %v152_v10 = vld [vmem:[#allocation7 + $0x140] sm:$0xff]  ;;  %v253_v12 = vld [vmem:[#allocation9 + $0x108] sm:$0xff]  ;;  %v142_v14 = vld [vmem:[#allocation7 + $0xf0] sm:$0xff] }
  0x26   :  { %162 = vmatpush.msra.mxu0 %v151_v4  ;;  %181 = vmatpush.msra.mxu1 %v155_v7  ;;  %v149_v13 = vld [vmem:[#allocation7 + $0x128] sm:$0xff]  ;;  %v250_v15 = vld [vmem:[#allocation9 + $0xf0] sm:$0xff]  ;;  %v139_v17 = vld [vmem:[#allocation7 + $0xd8] sm:$0xff] }
  0x27   :  { %270 = vmatpush.msra.mxu3 %v259_v5  ;;  %v146_v16 = vld [vmem:[#allocation7 + $0x110] sm:$0xff]  ;;  %v247_v18 = vld [vmem:[#allocation9 + $0xd8] sm:$0xff]  ;;  %v136_v20 = vld [vmem:[#allocation7 + $0xc0] sm:$0xff] }
  0x28   :  { %163 = vmatpush.msra.mxu0 %v148_v8  ;;  %182 = vmatpush.msra.mxu1 %v152_v10  ;;  %v143_v19 = vld [vmem:[#allocation7 + $0xf8] sm:$0xff]  ;;  %v244_v21 = vld [vmem:[#allocation9 + $0xc0] sm:$0xff]  ;;  %v133_v23 = vld [vmem:[#allocation7 + $0xa8] sm:$0xff] }
  0x29   :  { %271 = vmatpush.msra.mxu3 %v256_v9  ;;  %v140_v22 = vld [vmem:[#allocation7 + $0xe0] sm:$0xff]  ;;  %v241_v24 = vld [vmem:[#allocation9 + $0xa8] sm:$0xff]  ;;  %v130_v26 = vld [vmem:[#allocation7 + $0x90] sm:$0xff] }
  0x2a   :  { %164 = vmatpush.msra.mxu0 %v145_v11  ;;  %183 = vmatpush.msra.mxu1 %v149_v13  ;;  %v137_v25 = vld [vmem:[#allocation7 + $0xc8] sm:$0xff]  ;;  %v238_v27 = vld [vmem:[#allocation9 + $0x90] sm:$0xff]  ;;  %v159_v28 = vld [vmem:[#allocation7 + $0x178] sm:$0xff] }
  0x2b   :  { %272 = vmatpush.msra.mxu3 %v253_v12  ;;  %v134_v29 = vld [vmem:[#allocation7 + $0xb0] sm:$0xff]  ;;  %v156_v30 = vld [vmem:[#allocation7 + $0x160] sm:$0xff]  ;;  %v127_v31 = vld [vmem:[#allocation7 + $0x78] sm:$0xff]  ;;  %200 = vmatpush.msra.mxu2 %v159_v28 }
  0x2c   :  { %165 = vmatpush.msra.mxu0 %v142_v14  ;;  %184 = vmatpush.msra.mxu1 %v146_v16  ;;  %v235_v32 = vld [vmem:[#allocation9 + $0x78] sm:$0xff]  ;;  %v153_v34 = vld [vmem:[#allocation7 + $0x148] sm:$0xff]  ;;  %v124_v35 = vld [vmem:[#allocation7 + $0x60] sm:$0xff] }
  0x2d   :  { %273 = vmatpush.msra.mxu3 %v250_v15  ;;  %v131_v33 = vld [vmem:[#allocation7 + $0x98] sm:$0xff]  ;;  %v232_v36 = vld [vmem:[#allocation9 + $0x60] sm:$0xff]  ;;  %201 = vmatpush.msra.mxu2 %v156_v30  ;;  %v150_v38 = vld [vmem:[#allocation7 + $0x130] sm:$0xff] }
  0x2e   :  { %166 = vmatpush.msra.mxu0 %v139_v17  ;;  %185 = vmatpush.msra.mxu1 %v143_v19  ;;  %v128_v37 = vld [vmem:[#allocation7 + $0x80] sm:$0xff]  ;;  %v121_v39 = vld [vmem:[#allocation7 + $0x48] sm:$0xff]  ;;  %v147_v42 = vld [vmem:[#allocation7 + $0x118] sm:$0xff] }
  0x2f   :  { %274 = vmatpush.msra.mxu3 %v247_v18  ;;  %v229_v40 = vld [vmem:[#allocation9 + $0x48] sm:$0xff]  ;;  %202 = vmatpush.msra.mxu2 %v153_v34  ;;  %v118_v43 = vld [vmem:[#allocation7 + $0x30] sm:$0xff]  ;;  %v144_v46 = vld [vmem:[#allocation7 + $0x100] sm:$0xff] }
  0x30   :  { %167 = vmatpush.msra.mxu0 %v136_v20  ;;  %186 = vmatpush.msra.mxu1 %v140_v22  ;;  %v125_v41 = vld [vmem:[#allocation7 + $0x68] sm:$0xff]  ;;  %v226_v44 = vld [vmem:[#allocation9 + $0x30] sm:$0xff]  ;;  %v115_v47 = vld [vmem:[#allocation7 + $0x18] sm:$0xff] }
  0x31   :  { %275 = vmatpush.msra.mxu3 %v244_v21  ;;  %203 = vmatpush.msra.mxu2 %v150_v38  ;;  %v122_v45 = vld [vmem:[#allocation7 + $0x50] sm:$0xff]  ;;  %v223_v48 = vld [vmem:[#allocation9 + $0x18] sm:$0xff]  ;;  %v141_v51 = vld [vmem:[#allocation7 + $0xe8] sm:$0xff] }
  0x32   :  { %168 = vmatpush.msra.mxu0 %v133_v23  ;;  %187 = vmatpush.msra.mxu1 %v137_v25  ;;  %v109_v49 = vld [vmem:[#allocation4] sm:$0x1]  ;;  %v112_v52 = vld [vmem:[#allocation7] sm:$0xff]  ;;  %v266_v54 = vld [vmem:[#allocation9 + $0x170] sm:$0xff] }
  0x33   :  { %276 = vmatpush.msra.mxu3 %v241_v24  ;;  %204 = vmatpush.msra.mxu2 %v147_v42  ;;  %v119_v50 = vld [vmem:[#allocation7 + $0x38] sm:$0xff]  ;;  %v220_v53 = vld [vmem:[#allocation9] sm:$0xff]  ;;  %v834_v56 = vmax.f32 %v109_v49, 0.0  ;;  %v138_v59 = vld [vmem:[#allocation7 + $0xd0] sm:$0xff] }
  0x34   :  { %169 = vmatpush.msra.mxu0 %v130_v26  ;;  %188 = vmatpush.msra.mxu1 %v134_v29  ;;  %v832_v55 = vld [vmem:[#allocation10] sm:$0x1]  ;;  %v263_v58 = vld [vmem:[#allocation9 + $0x158] sm:$0xff]  ;;  %v113_v60 = vld [vmem:[#allocation7 + $0x8] sm:$0xff] }
  0x35   :  { %277 = vmatpush.msra.mxu3 %v238_v27  ;;  %205 = vmatpush.msra.mxu2 %v144_v46  ;;  %v116_v57 = vld [vmem:[#allocation7 + $0x20] sm:$0xff]  ;;  %v267_v62 = vld [vmem:[#allocation9 + $0x178] sm:$0xff]  ;;  %v257_v0 = vld [vmem:[#allocation9 + $0x128] sm:$0xff] }
  0x36   :  { %170 = vmatpush.msra.mxu0 %v127_v31  ;;  %189 = vmatpush.msra.mxu1 %v131_v33  ;;  %v260_v61 = vld [vmem:[#allocation9 + $0x140] sm:$0xff]  ;;  %v135_v63 = vld [vmem:[#allocation7 + $0xb8] sm:$0xff]  ;;  %v254_v3 = vld [vmem:[#allocation9 + $0x110] sm:$0xff] }
  0x37   :  { %278 = vmatpush.msra.mxu3 %v235_v32  ;;  %206 = vmatpush.msra.mxu2 %v141_v51  ;;  %v264_v1 = vld [vmem:[#allocation9 + $0x160] sm:$0xff]  ;;  %v261_v4 = vld [vmem:[#allocation9 + $0x148] sm:$0xff]  ;;  %v251_v6 = vld [vmem:[#allocation9 + $0xf8] sm:$0xff] }
  0x38   :  { %171 = vmatpush.msra.mxu0 %v124_v35  ;;  %190 = vmatpush.msra.mxu1 %v128_v37  ;;  %v132_v2 = vld [vmem:[#allocation7 + $0xa0] sm:$0xff]  ;;  %v129_v5 = vld [vmem:[#allocation7 + $0x88] sm:$0xff]  ;;  %v258_v7 = vld [vmem:[#allocation9 + $0x130] sm:$0xff] }
  0x39   :  { %279 = vmatpush.msra.mxu3 %v232_v36  ;;  %207 = vmatpush.msra.mxu2 %v138_v59  ;;  %v126_v8 = vld [vmem:[#allocation7 + $0x70] sm:$0xff]  ;;  %v248_v9 = vld [vmem:[#allocation9 + $0xe0] sm:$0xff]  ;;  %v255_v10 = vld [vmem:[#allocation9 + $0x118] sm:$0xff] }
  0x3a   :  { %172 = vmatpush.msra.mxu0 %v121_v39  ;;  %191 = vmatpush.msra.mxu1 %v125_v41  ;;  %v123_v11 = vld [vmem:[#allocation7 + $0x58] sm:$0xff]  ;;  %v245_v12 = vld [vmem:[#allocation9 + $0xc8] sm:$0xff]  ;;  %v252_v13 = vld [vmem:[#allocation9 + $0x100] sm:$0xff] }
  0x3b   :  { %280 = vmatpush.msra.mxu3 %v229_v40  ;;  %208 = vmatpush.msra.mxu2 %v135_v63  ;;  %v120_v14 = vld [vmem:[#allocation7 + $0x40] sm:$0xff]  ;;  %v242_v15 = vld [vmem:[#allocation9 + $0xb0] sm:$0xff]  ;;  %v249_v16 = vld [vmem:[#allocation9 + $0xe8] sm:$0xff] }
  0x3c   :  { %173 = vmatpush.msra.mxu0 %v118_v43  ;;  %192 = vmatpush.msra.mxu1 %v122_v45  ;;  %v117_v17 = vld [vmem:[#allocation7 + $0x28] sm:$0xff]  ;;  %v239_v18 = vld [vmem:[#allocation9 + $0x98] sm:$0xff]  ;;  %v246_v19 = vld [vmem:[#allocation9 + $0xd0] sm:$0xff] }
  0x3d   :  { %281 = vmatpush.msra.mxu3 %v226_v44  ;;  %209 = vmatpush.msra.mxu2 %v132_v2  ;;  %v114_v20 = vld [vmem:[#allocation7 + $0x10] sm:$0xff]  ;;  %v236_v21 = vld [vmem:[#allocation9 + $0x80] sm:$0xff]  ;;  %v243_v22 = vld [vmem:[#allocation9 + $0xb8] sm:$0xff] }
  0x3e   :  { %174 = vmatpush.msra.mxu0 %v115_v47  ;;  %193 = vmatpush.msra.mxu1 %v119_v50  ;;  %v233_v23 = vld [vmem:[#allocation9 + $0x68] sm:$0xff]  ;;  %v240_v24 = vld [vmem:[#allocation9 + $0xa0] sm:$0xff]  ;;  %v230_v25 = vld [vmem:[#allocation9 + $0x50] sm:$0xff] }
  0x3f   :  { %282 = vmatpush.msra.mxu3 %v223_v48  ;;  %210 = vmatpush.msra.mxu2 %v129_v5  ;;  %v237_v26 = vld [vmem:[#allocation9 + $0x88] sm:$0xff]  ;;  %v227_v27 = vld [vmem:[#allocation9 + $0x38] sm:$0xff]  ;;  %v234_v28 = vld [vmem:[#allocation9 + $0x70] sm:$0xff] }
  0x40   :  { %175 = vmatpush.msra.mxu0 %v112_v52  ;;  %194 = vmatpush.msra.mxu1 %v116_v57  ;;  %v224_v29 = vld [vmem:[#allocation9 + $0x20] sm:$0xff]  ;;  %v231_v30 = vld [vmem:[#allocation9 + $0x58] sm:$0xff]  ;;  %v221_v31 = vld [vmem:[#allocation9 + $0x8] sm:$0xff] }
  0x41   :  { %283 = vmatpush.msra.mxu3 %v220_v53  ;;  %176 = vmatmul.f32.vlgmr.msra.gmra.mxu0 %v834_v56  ;;  %v228_v32 = vld [vmem:[#allocation9 + $0x40] sm:$0xff]  ;;  %v225_v33 = vld [vmem:[#allocation9 + $0x28] sm:$0xff]  ;;  %v222_v34 = vld [vmem:[#allocation9 + $0x10] sm:$0xff] }
  0x42   :  { %288 = vmatpush.msrb.mxu0 %v266_v54  ;;  %284 = vmatmul.f32.vlgmr.msra.gmra.mxu3 %v832_v55  ;;  %v845_v37 = vld [vmem:[%s870_s4] sm:$0xf]  ;;  %v418_v38 = vld [vmem:[#allocation12 + $0xf0] sm:$0xff]  ;;  %v416_v41 = vld [vmem:[#allocation12 + $0xe0] sm:$0xff] }
  0x43   :  { %195 = vmatpush.msra.mxu1 %v113_v60  ;;  %211 = vmatpush.msra.mxu2 %v126_v8  ;;  %v419_v39 = vld [vmem:[#allocation12 + $0xf8] sm:$0xff]  ;;  %v417_v42 = vld [vmem:[#allocation12 + $0xe8] sm:$0xff]  ;;  %v414_v44 = vld [vmem:[#allocation12 + $0xd0] sm:$0xff] }
  0x44   :  { %289 = vmatpush.msrb.mxu0 %v263_v58  ;;  %196 = vmatmul.f32.vlgmr.msra.gmra.mxu1 %v834_v56  ;;  %v415_v45 = vld [vmem:[#allocation12 + $0xd8] sm:$0xff]  ;;  %v412_v47 = vld [vmem:[#allocation12 + $0xc0] sm:$0xff]  ;;  %v413_v48 = vld [vmem:[#allocation12 + $0xc8] sm:$0xff] }
  0x45   :  { %308 = vmatpush.msrb.mxu1 %v267_v62  ;;  %212 = vmatpush.msra.mxu2 %v123_v11  ;;  %v410_v49 = vld [vmem:[#allocation12 + $0xb0] sm:$0xff]  ;;  %v411_v50 = vld [vmem:[#allocation12 + $0xb8] sm:$0xff]  ;;  %v408_v51 = vld [vmem:[#allocation12 + $0xa0] sm:$0xff] }
  0x46   :  { %290 = vmatpush.msrb.mxu0 %v260_v61  ;;  %446 = vmatpush.msrb.mxu3 %v419_v39  ;;  %v409_v52 = vld [vmem:[#allocation12 + $0xa8] sm:$0xff]  ;;  %v406_v53 = vld [vmem:[#allocation12 + $0x90] sm:$0xff]  ;;  %v407_v54 = vld [vmem:[#allocation12 + $0x98] sm:$0xff] }
  0x47   :  { %309 = vmatpush.msrb.mxu1 %v264_v1  ;;  %213 = vmatpush.msra.mxu2 %v120_v14  ;;  %v404_v58 = vld [vmem:[#allocation12 + $0x80] sm:$0xff]  ;;  %v405_v59 = vld [vmem:[#allocation12 + $0x88] sm:$0xff]  ;;  %v402_v60 = vld [vmem:[#allocation12 + $0x70] sm:$0xff] }
  0x48   :  { %291 = vmatpush.msrb.mxu0 %v257_v0  ;;  %447 = vmatpush.msrb.mxu3 %v417_v42  ;;  %v403_v61 = vld [vmem:[#allocation12 + $0x78] sm:$0xff]  ;;  %v400_v62 = vld [vmem:[#allocation12 + $0x60] sm:$0xff]  ;;  %v401_v63 = vld [vmem:[#allocation12 + $0x68] sm:$0xff] }
  0x49   :  { %310 = vmatpush.msrb.mxu1 %v261_v4  ;;  %214 = vmatpush.msra.mxu2 %v117_v17  ;;  %v398_v0 = vld [vmem:[#allocation12 + $0x50] sm:$0xff]  ;;  %v399_v1 = vld [vmem:[#allocation12 + $0x58] sm:$0xff]  ;;  %v396_v2 = vld [vmem:[#allocation12 + $0x40] sm:$0xff] }
  0x4a   :  { %292 = vmatpush.msrb.mxu0 %v254_v3  ;;  %448 = vmatpush.msrb.mxu3 %v415_v45  ;;  %v397_v3 = vld [vmem:[#allocation12 + $0x48] sm:$0xff]  ;;  %v394_v5 = vld [vmem:[#allocation12 + $0x30] sm:$0xff] }
  0x4b   :  { %311 = vmatpush.msrb.mxu1 %v258_v7  ;;  %215 = vmatpush.msra.mxu2 %v114_v20  ;;  %v393_v11 = vld [vmem:[#allocation12 + $0x28] sm:$0xff]  ;;  %v390_v14 = vld [vmem:[#allocation12 + $0x10] sm:$0xff] }
  0x4c   :  { %293 = vmatpush.msrb.mxu0 %v251_v6  ;;  %216 = vmatmul.f32.vlgmr.msra.gmra.mxu2 %v834_v56  ;;  %v395_v6 = vld [vmem:[#allocation12 + $0x38] sm:$0xff] }
  0x4d   :  { %312 = vmatpush.msrb.mxu1 %v255_v10  ;;  %426 = vmatpush.msrb.mxu2 %v418_v38  ;;  %v392_v10 = vld [vmem:[#allocation12 + $0x20] sm:$0xff] }
  0x4e   :  { %294 = vmatpush.msrb.mxu0 %v248_v9  ;;  %449 = vmatpush.msrb.mxu3 %v413_v48  ;;  %v352_v9 = vperm.slane %v845_v37, 1 }
  0x4f   :  { %313 = vmatpush.msrb.mxu1 %v252_v13  ;;  %427 = vmatpush.msrb.mxu2 %v416_v41 }
  0x50   :  { %295 = vmatpush.msrb.mxu0 %v245_v12  ;;  %450 = vmatpush.msrb.mxu3 %v411_v50 }
  0x51   :  { %314 = vmatpush.msrb.mxu1 %v249_v16  ;;  %428 = vmatpush.msrb.mxu2 %v414_v44 }
  0x52   :  { %296 = vmatpush.msrb.mxu0 %v242_v15  ;;  %451 = vmatpush.msrb.mxu3 %v409_v52  ;;  %v391_v15 = vld [vmem:[#allocation12 + $0x18] sm:$0xff] }
  0x53   :  { %315 = vmatpush.msrb.mxu1 %v246_v19  ;;  %429 = vmatpush.msrb.mxu2 %v412_v47  ;;  %v389_v19 = vld [vmem:[#allocation12 + $0x8] sm:$0xff] }
  0x54   :  { %297 = vmatpush.msrb.mxu0 %v239_v18  ;;  %452 = vmatpush.msrb.mxu3 %v407_v54  ;;  %v388_v18 = vld [vmem:[#allocation12] sm:$0xff] }
  0x55   :  { %316 = vmatpush.msrb.mxu1 %v243_v22  ;;  %430 = vmatpush.msrb.mxu2 %v410_v49 }
  0x56   :  { %298 = vmatpush.msrb.mxu0 %v236_v21  ;;  %453 = vmatpush.msrb.mxu3 %v405_v59 }
  0x57   :  { %317 = vmatpush.msrb.mxu1 %v240_v24  ;;  %431 = vmatpush.msrb.mxu2 %v408_v51 }
  0x58   :  { %299 = vmatpush.msrb.mxu0 %v233_v23  ;;  %454 = vmatpush.msrb.mxu3 %v403_v61 }
  0x59   :  { %318 = vmatpush.msrb.mxu1 %v237_v26  ;;  %432 = vmatpush.msrb.mxu2 %v406_v53  ;;  %v420_v53 = vld [vmem:[%s873_s7] sm:$0x3]  ;;  %s750_s7 = smov [#allocation14]  }
  0x5a   :  { %300 = vmatpush.msrb.mxu0 %v230_v25  ;;  %455 = vmatpush.msrb.mxu3 %v401_v63  ;;  %v377_v25 = vperm.slane %v845_v37, 3  ;;  %v422_v54 = vperm.slane %v420_v53, 0  ;;  %s514_s23 = sshll.u32 %s750_s7, 4  ;;  %s515_s23 = int_to_ptr.vmem [resolvable:$true] %s514_s23 }
  0x5b   :  { %319 = vmatpush.msrb.mxu1 %v234_v28  ;;  %433 = vmatpush.msrb.mxu2 %v404_v58 }
  0x5c   :  { %301 = vmatpush.msrb.mxu0 %v227_v27  ;;  %456 = vmatpush.msrb.mxu3 %v399_v1 }
  0x5d   :  { %320 = vmatpush.msrb.mxu1 %v231_v30  ;;  %434 = vmatpush.msrb.mxu2 %v402_v60 }
  0x5e   :  { %302 = vmatpush.msrb.mxu0 %v224_v29  ;;  %457 = vmatpush.msrb.mxu3 %v397_v3 }
  0x5f   :  { %321 = vmatpush.msrb.mxu1 %v228_v32  ;;  %435 = vmatpush.msrb.mxu2 %v400_v62  ;;  %v374_v32 = vperm.slane %v845_v37, 2 }
  0x60   :  { %303 = vmatpush.msrb.mxu0 %v221_v31  ;;  %458 = vmatpush.msrb.mxu3 %v395_v6 }
  0x61   :  { %304 = vmatmul.f32.vlgmr.msrb.gmra.mxu0 %v832_v55  ;;  %322 = vmatpush.msrb.mxu1 %v225_v33 }
  0x62   :  { %436 = vmatpush.msrb.mxu2 %v398_v0  ;;  %459 = vmatpush.msrb.mxu3 %v393_v11 }
  0x63   :  { %323 = vmatpush.msrb.mxu1 %v222_v34 }
  0x64   :  { %324 = vmatmul.f32.vlgmr.msrb.gmra.mxu1 %v832_v55  ;;  %437 = vmatpush.msrb.mxu2 %v396_v2 }
  0x65   :  { %460 = vmatpush.msrb.mxu3 %v391_v15 }
  0x66   :  { %438 = vmatpush.msrb.mxu2 %v394_v5 }
  0x67   :  { %461 = vmatpush.msrb.mxu3 %v389_v19 }
  0x68   :  { %439 = vmatpush.msrb.mxu2 %v392_v10 }
  0x6a   :  { %440 = vmatpush.msrb.mxu2 %v390_v14 }
  0x6c   :  { %441 = vmatpush.msrb.mxu2 %v388_v18 }
  0xbe   :  { %v177_v35 = vpop.f32.mrf.mxu0 }
  0xc1   :  { %v197_v7 = vpop.f32.mrf.mxu1 }
  0xc5   :  { %v285_v36 = vpop.f32.mrf.mxu3 }
  0xc6   :  { %v329_v40 = vadd.f32 %v285_v36, %v177_v35 }
  0xc8   :  { %v330_v43 = vadd.f32 %v329_v40, %v845_v37 }
  0xca   :  { %v534_v46 = vmul.f32 -1.442695, %v330_v43 }
  0xcc   :  { %547 = vpow2.f32 %v534_v46 }
  0xcf   :  { %v217_v34 = vpop.f32.mrf.mxu2 }
  0xd0   :  { %v376_v36 = vadd.f32 %v374_v32, %v217_v34 }
  0xd2   :  { %v548_v56 = vpop.eup %547 }
  0xd3   :  { %v334_v57 = vadd.f32 1.0, %v548_v56  ;;  %v423_v56 = vperm.slane %v420_v53, 1 }
  0xd5   :  { %549 = vrcp.f32 %v334_v57  ;;  %vm340_vm0 = vweird.f32 %v334_v57  ;;  %v346_v22 = vand.u32 2147483648, %v334_v57  ;;  %v344_v24 = vand.u32 2147483647, %v334_v57 }
  0xd7   :  { %v347_v28 = vor.u32 1.1754944e-38, %v346_v22  ;;  %vm345_vm3 = vcmp.eq.f32.partialorder %v344_v24, 8.507059e+37 }
  0xdb   :  { %v550_v4 = vpop.eup %549 }
  0xdc   :  { %v336_v8 = vmul.f32 %v550_v4, %v334_v57  ;;  %vm341_vm1 = vweird.f32 %v550_v4 }
  0xdd   :  { %vm342_vm2 = vmor %vm340_vm0, %vm341_vm1 }
  0xde   :  { %v305_v12 = vpop.f32.mrf.mxu0  ;;  %v337_v16 = vsub.f32 1.0, %v336_v8 }
  0xdf   :  { %v350_v13 = vadd.f32 %v305_v12, %v197_v7 }
  0xe0   :  { %v338_v21 = vmul.f32 %v550_v4, %v337_v16 }
  0xe1   :  { %v354_v17 = vadd.f32 %v352_v9, %v350_v13  ;;  %v325_v27 = vpop.f32.mrf.mxu1  ;;  %v493_v13 = vlaneseq }
  0xe2   :  { %v339_v23 = vadd.f32 %v550_v4, %v338_v21  ;;  %v379_v31 = vadd.f32 %v377_v25, %v325_v27 }
  0xe3   :  { %v535_v20 = vmul.f32 -1.442695, %v354_v17  ;;  %vm495_vm9 = vcmp.lt.s32.totalorder %v493_v13, 256 }
  0xe4   :  { %v343_v30 = vsel %vm342_vm2, %v550_v4, %v339_v23 }
  0xe5   :  { %551 = vpow2.f32 %v535_v20  ;;  %v348_v33 = vsel %vm345_vm3, %v347_v28, %v343_v30 }
  0xe6   :  { %v380_v35 = vmul.f32 %v379_v31, %v348_v33 }
  0xe8   :  { %v381_v40 = vadd.f32 %v380_v35, %v376_v36 }
  0xeb   :  { %v552_v26 = vpop.eup %551 }
  0xec   :  { %v358_v29 = vadd.f32 1.0, %v552_v26 }
  0xee   :  { %553 = vrcp.f32 %v358_v29  ;;  %v370_v42 = vand.u32 2147483648, %v358_v29  ;;  %v368_v44 = vand.u32 2147483647, %v358_v29  ;;  %vm364_vm5 = vweird.f32 %v358_v29 }
  0xef   :  { %555 = vtanh.f32 %v381_v40 }
  0xf0   :  { %v371_v46 = vor.u32 1.1754944e-38, %v370_v42  ;;  %vm369_vm7 = vcmp.eq.f32.partialorder %v368_v44, 8.507059e+37 }
  0xf4   :  { %v554_v38 = vpop.eup %553 }
  0xf5   :  { %v360_v39 = vmul.f32 %v554_v38, %v358_v29  ;;  %vm365_vm4 = vweird.f32 %v554_v38  ;;  %v556_v49 = vpop.eup %555 }
  0xf6   :  { %vm366_vm6 = vmor %vm364_vm5, %vm365_vm4 }
  0xf7   :  { %v361_v41 = vsub.f32 1.0, %v360_v39 }
  0xf9   :  { %v362_v43 = vmul.f32 %v554_v38, %v361_v41 }
  0xfb   :  { %v363_v45 = vadd.f32 %v554_v38, %v362_v43 }
  0xfd   :  { %v367_v47 = vsel %vm366_vm6, %v554_v38, %v363_v45 }
  0xfe   :  { %v372_v37 = vsel %vm369_vm7, %v371_v46, %v367_v47 }
  0xff   :  { %v383_v48 = vsub.f32 1.0, %v372_v37  ;;  %v385_v51 = vmul.f32 %v372_v37, %v832_v55 }
 0x101   :  { %v384_v50 = vmul.f32 %v556_v49, %v383_v48 }
 0x103   :  { %v386_v52 = vadd.f32 %v385_v51, %v384_v50 }
 0x105   :  { %442 = vmatmul.f32.vlgmr.msrb.gmra.mxu2 %v386_v52  ;;  %387 = vst [vmem:[#allocation14] sm:$0x1] %v386_v52  ;;  %462 = vmatmul.f32.vlgmr.msrb.gmra.mxu3 %v386_v52 }
 0x106   :  { %519 = dma.vmem_to_hbm [thread:$0]  %s515_s23, 16, %s517_s5, [#allocation15]  }
 0x188   :  { %v443_v57 = vpop.f32.mrf.mxu2  ;;  %v463_v58 = vpop.f32.mrf.mxu3 }
 0x189   :  { %v444_v59 = vadd.f32 %v443_v57, %v422_v54  ;;  %v464_v60 = vadd.f32 %v463_v58, %v423_v56 }
 0x18b   :  { %v467_v61 = vsel %vm466_vm8, %v444_v59, -inf  ;;  %v468_v62 = vsel %vm466_vm8, %v464_v60, -inf }
 0x18c   :  { %v469_v55 = vmax.f32 %v467_v61, %v468_v62 }
 0x18e   :  { %470 = vmax.xlane.f32.xlu0 %v469_v55 }
 0x201   :  { %v471_v63 = vpop.xlane.xlu0 %470 }
 0x202   :  { %v472_v0 = vsub.f32 %v444_v59, %v471_v63  ;;  %v473_v1 = vsub.f32 %v464_v60, %v471_v63 }
 0x204   :  { %v474_v2 = vmul.f32 1.442695, %v472_v0  ;;  %v476_v3 = vmul.f32 1.442695, %v473_v1 }
 0x206   :  { %557 = vpow2.f32 %v474_v2 }
 0x207   :  { %559 = vpow2.f32 %v476_v3 }
 0x20c   :  { %v558_v4 = vpop.eup %557 }
 0x20d   :  { %v560_v5 = vpop.eup %559  ;;  %v478_v6 = vsel %vm466_vm8, %v558_v4, 0.0 }
 0x20e   :  { %v479_v7 = vsel %vm466_vm8, %v560_v5, 0.0 }
 0x20f   :  { %v480_v8 = vadd.f32 %v479_v7, %v478_v6 }
 0x211   :  { %481 = vadd.xlane.f32.xlu0 %v480_v8 }
 0x284   :  { %v482_v9 = vpop.xlane.xlu0 %481 }
 0x285   :  { %561 = vlog2.f32 %v482_v9 }
 0x28b   :  { %v562_v10 = vpop.eup %561 }
 0x28c   :  { %v484_v11 = vmul.f32 0.6931472, %v562_v10 }
 0x28e   :  { %v485_v12 = vadd.f32 %v484_v11, %v471_v63 }
 0x290   :  { %v487_v14 = vsub.f32 %v464_v60, %v485_v12  ;;  %v486_v15 = vsub.f32 %v444_v59, %v485_v12 }
 0x292   :  { %v490_v16 = vrot.slane %v487_v14, 7 }
 0x294   :  { %v491_v17 = vsel %vm466_vm8, %v486_v15, %v490_v16 }
 0x295   :  { %497 = vst.msk [vmem:[#allocation13] sm:$0x3] %vm495_vm9, %v491_v17 }
 0x296   :  { %508 = dma.vmem_to_hbm [thread:$0]  %s504_s27, 32, %s506_s30, [#allocation6]  }
 0x297   :  { %737 = dma.done.wait [#allocation6], 32  }
 0x298   :  { %738 = vsyncadd [#allocation6], 4294967264 }
 0x299   :  { %739 = dma.done.wait [#allocation15], 16  }
 0x29a   :  { %740 = vsyncadd [#allocation15], 4294967280 }
 0x29b   :  { %528 = vsyncpa [#allocation5], 1 }
 0x29c   :  { %529 = vsyncpa [#allocation8], 1 }
 0x29d   :  { %530 = vsyncpa [#allocation11], 1 }
 0x29e   :  { %531 = vsyncpa [#allocation6], 1 }
 0x29f   :  { %532 = vsyncpa [#allocation15], 1 }

</bundles_post_ra>
